<compile_context>
chip_gen: v6e
topology: v6e:2x2x1
jax: 0.10.0
libtpu: 0.0.40
codegen_flags: <defaults>
</compile_context>

<pallas_src>
import jax
import jax.numpy as jnp
from jax.experimental import pallas as pl
from jax.experimental.pallas import tpu as pltpu


def _ceil_div(a, b):
    return -(-a // b)


def edge_extract_classifier(x_nchw, w_conv_first, bn_gamma, bn_beta,
                            bn_mean, bn_var, w_conv_final, b_conv_final,
                            eps=1e-5, target_band_px=16384):
    """Forward pass. x_nchw: (N, Cin, H, W) float32 -> (N, 1, H, W) float32."""
    N, Cin, H, W = x_nchw.shape
    Ws = W + 2                                   # padded row stride (lane layout)

    # ---- rows per band: big enough to amortize per-step overhead, small enough
    #      that the (double-buffered) input block stays well inside VMEM. ----
    max_rows_vmem = max(1, (4 * 1024 * 1024) // (Cin * Ws * 4) - 2)
    hb = min(H, max(1, min(_ceil_div(target_band_px, W), max_rows_vmem)))
    nb = _ceil_div(H, hb)
    if N * nb < 2 and H >= 2:                    # keep >=2 grid steps for v7x's 2 TCs
        nb = 2
        hb = _ceil_div(H, nb)
    H_pad = nb * hb                              # rows, padded up to a whole band

    Lb = (hb + 2) * Ws                           # flattened band frame (with halo rows)
    margin = _ceil_div(Ws + 1, 128) * 128        # zero margin so every tap slice is in-range
    Lm = Lb + 2 * margin
    G = N * nb                                   # grid size (parallel axis)

    # ---- wrapper-side layout: zero-pad spatially, split into row bands with a
    #      1-row halo on each side, flatten each band, add lane margins. ----
    x32 = x_nchw.astype(jnp.float32)
    xp = jnp.pad(x32, ((0, 0), (0, 0), (1, 1 + H_pad - H), (1, 1)))   # (N,Cin,H_pad+2,Ws)
    bands = []
    for b in range(nb):
        sl = xp[:, :, b * hb: b * hb + hb + 2, :]                     # (N,Cin,hb+2,Ws)
        flat = sl.reshape(N, Cin, Lb)
        bands.append(jnp.pad(flat, ((0, 0), (0, 0), (margin, margin))))
    x_bands = jnp.stack(bands, axis=1).reshape(G, Cin, Lm)            # (G,Cin,Lm)

    # ---- fold BN into conv weights; per-tap weight tensor + tiny "post" params ----
    scale = (bn_gamma / jnp.sqrt(bn_var + eps)).astype(jnp.float32)       # (8,)
    shift = bn_beta.astype(jnp.float32) - bn_mean.astype(jnp.float32) * scale
    w1 = w_conv_first.astype(jnp.float32) * scale[:, None, None, None]    # (8,Cin,3,3)
    w_taps = jnp.transpose(w1, (2, 3, 0, 1)).reshape(9, 8, Cin)           # k = dy*3+dx
    w2 = w_conv_final.reshape(8).astype(jnp.float32)
    b2 = b_conv_final.reshape(()).astype(jnp.float32)
    post = jnp.zeros((8, 4), jnp.float32)
    post = post.at[:, 0].set(shift)              # BN shift (conv1 bias after folding)
    post = post.at[:, 1].set(w2)                 # 1x1 conv weights
    post = post.at[0, 2].set(b2)                 # 1x1 conv bias

    # ---- kernel: in-VMEM im2col via static lane-offset slices + 9 MXU matmuls ----
    def kernel(x_ref, w_ref, post_ref, o_ref):
        # x_ref:    (1, Cin, Lm)   padded, flattened band (with lane margins)
        # w_ref:    (9, 8, Cin)    BN-folded 3x3 weights, one (8,Cin) slab per tap
        # post_ref: (8, 4)         col0 = shift, col1 = w2, [0,2] = b2
        # o_ref:    (1, 1, Lb)     conv output over the whole band frame
        shift_c = post_ref[:, 0:1]               # (8, 1)
        w2_c = post_ref[:, 1:2]                  # (8, 1)
        b2_c = post_ref[0:1, 2:3]                # (1, 1)

        acc = jnp.zeros((8, Lb), jnp.float32)
        for i in range(3):                       # tap assembly: static lane-shifted
            for j in range(3):                   # views of the band, no HBM traffic
                off = margin + (i - 1) * Ws + (j - 1)
                tap = x_ref[0, :, off:off + Lb]  # (Cin, Lb)
                acc = acc + jnp.dot(w_ref[i * 3 + j], tap,
                                    preferred_element_type=jnp.float32)

        h = jnp.maximum(acc + shift_c, 0.0)      # BN shift + ReLU
        res = jnp.sum(h * w2_c, axis=0, keepdims=True) + b2_c   # 1x1 conv + bias
        o_ref[0] = res.astype(o_ref.dtype)

    flops = G * Lb * (2 * 9 * Cin * 8 + 4 * 8)
    bytes_accessed = (x_bands.size + G * Lb + w_taps.size + post.size) * 4
    cost = pl.CostEstimate(flops=int(flops), transcendentals=0,
                           bytes_accessed=int(bytes_accessed))

    out = pl.pallas_call(
        kernel,
        out_shape=jax.ShapeDtypeStruct((G, 1, Lb), jnp.float32),
        grid_spec=pltpu.PrefetchScalarGridSpec(
            num_scalar_prefetch=0,
            grid=(G,),
            in_specs=[
                pl.BlockSpec((1, Cin, Lm), lambda g: (g, 0, 0)),
                pl.BlockSpec((9, 8, Cin), lambda g: (0, 0, 0)),
                pl.BlockSpec((8, 4), lambda g: (0, 0)),
            ],
            out_specs=pl.BlockSpec((1, 1, Lb), lambda g: (g, 0, 0)),
        ),
        compiler_params=pltpu.CompilerParams(
            dimension_semantics=("parallel",),
            vmem_limit_bytes=32 * 1024 * 1024),
        cost_estimate=cost,
    )(x_bands, w_taps, post)

    # strip halo rows / pad cols / padded bottom rows, re-stack bands
    out = out.reshape(N, nb, hb + 2, Ws)[:, :, 1:hb + 1, 1:W + 1]     # (N,nb,hb,W)
    out = out.reshape(N, nb * hb, W)[:, :H, :]
    return out[:, None, :, :]                                          # (N,1,H,W)


def _reference(x_nchw, w1, gamma, beta, mean, var, w2, b2, eps=1e-5):
    """Plain-JAX reference (NCHW) for a correctness check."""
    y = jax.lax.conv_general_dilated(
        x_nchw, w1, window_strides=(1, 1), padding=((1, 1), (1, 1)),
        dimension_numbers=("NCHW", "OIHW", "NCHW"),
        precision=jax.lax.Precision.HIGHEST)
    y = (y - mean[None, :, None, None]) / jnp.sqrt(var[None, :, None, None] + eps)
    y = y * gamma[None, :, None, None] + beta[None, :, None, None]
    y = jnp.maximum(y, 0.0)
    y = jax.lax.conv_general_dilated(
        y, w2, window_strides=(1, 1), padding="VALID",
        dimension_numbers=("NCHW", "OIHW", "NCHW"),
        precision=jax.lax.Precision.HIGHEST)
    return y + b2[None, :, None, None]


if __name__ == "__main__":
    key = jax.random.PRNGKey(0)
    k_x, k_w1, k_g, k_b, k_m, k_v, k_w2, k_b2 = jax.random.split(key, 8)

    N, Cin, H, W = 2, 4, 16, 16

    x = jax.random.normal(k_x, (N, Cin, H, W), dtype=jnp.float32)

    # Deterministic synthetic parameters (shapes from __init__).
    w_conv_first = jax.random.normal(k_w1, (8, Cin, 3, 3), dtype=jnp.float32) * 0.1
    bn_gamma = 1.0 + 0.1 * jax.random.normal(k_g, (8,), dtype=jnp.float32)
    bn_beta = 0.1 * jax.random.normal(k_b, (8,), dtype=jnp.float32)
    bn_mean = 0.05 * jax.random.normal(k_m, (8,), dtype=jnp.float32)
    bn_var = 1.0 + 0.1 * jnp.abs(jax.random.normal(k_v, (8,), dtype=jnp.float32))
    w_conv_final = jax.random.normal(k_w2, (1, 8, 1, 1), dtype=jnp.float32) * 0.2
    b_conv_final = 0.1 * jax.random.normal(k_b2, (1,), dtype=jnp.float32)

    fwd = jax.jit(edge_extract_classifier)
    out = fwd(x, w_conv_first, bn_gamma, bn_beta,
              bn_mean, bn_var, w_conv_final, b_conv_final)
    out = jax.block_until_ready(out)

    ref = _reference(x, w_conv_first, bn_gamma, bn_beta, bn_mean, bn_var,
                     w_conv_final, b_conv_final)
    assert out.shape == (N, 1, H, W), out.shape
    assert jnp.allclose(out, ref, atol=1e-4, rtol=1e-4), float(jnp.max(jnp.abs(out - ref)))

    print("KERNEL_OK")
</pallas_src>

<mosaic_0001>
module attributes {stable_mosaic.version = 11 : i64} {
  func.func @kernel(%arg0: i32, %arg1: memref<1x4x580xf32, #tpu.memory_space<vmem>>, %arg2: memref<9x8x4xf32, #tpu.memory_space<vmem>>, %arg3: memref<8x4xf32, #tpu.memory_space<vmem>>, %arg4: memref<1x1x324xf32, #tpu.memory_space<vmem>>) attributes {dimension_semantics = [#tpu.dimension_semantics<parallel>], iteration_bounds = array<i64: 2>, scalar_prefetch = 0 : i64, scratch_operands = 0 : i64, tpu.core_type = #tpu.core_type<tc>, window_params = [{transform_indices = @transform_0, window_bounds = array<i64: 1, 4, 580>}, {pipeline_mode = #tpu.pipeline_mode<synchronous>, transform_indices = @transform_1, window_bounds = array<i64: 9, 8, 4>}, {pipeline_mode = #tpu.pipeline_mode<synchronous>, transform_indices = @transform_2, window_bounds = array<i64: 8, 4>}, {transform_indices = @transform_3, window_bounds = array<i64: 1, 1, 324>}]} {
    %c0 = arith.constant 0 : index
    %c0_0 = arith.constant 0 : index
    %0 = vector.load %arg3[%c0, %c0_0] : memref<8x4xf32, #tpu.memory_space<vmem>>, vector<8x1xf32>
    %c0_1 = arith.constant 0 : index
    %c1 = arith.constant 1 : index
    %1 = vector.load %arg3[%c0_1, %c1] : memref<8x4xf32, #tpu.memory_space<vmem>>, vector<8x1xf32>
    %c0_2 = arith.constant 0 : index
    %c2 = arith.constant 2 : index
    %2 = vector.load %arg3[%c0_2, %c2] : memref<8x4xf32, #tpu.memory_space<vmem>>, vector<1x1xf32>
    %cst = arith.constant 0.000000e+00 : f32
    %3 = vector.broadcast %cst : f32 to vector<8x324xf32>
    %c0_3 = arith.constant 0 : index
    %c0_4 = arith.constant 0 : index
    %c109 = arith.constant 109 : index
    %4 = vector.load %arg1[%c0_3, %c0_4, %c109] : memref<1x4x580xf32, #tpu.memory_space<vmem>>, vector<1x4x324xf32>
    %5 = vector.shape_cast %4 : vector<1x4x324xf32> to vector<4x324xf32>
    %c0_5 = arith.constant 0 : index
    %c0_6 = arith.constant 0 : index
    %c0_7 = arith.constant 0 : index
    %6 = vector.load %arg2[%c0_5, %c0_6, %c0_7] : memref<9x8x4xf32, #tpu.memory_space<vmem>>, vector<1x8x4xf32>
    %7 = vector.shape_cast %6 : vector<1x8x4xf32> to vector<8x4xf32>
    %cst_8 = arith.constant dense<0.000000e+00> : vector<8x324xf32>
    %8 = tpu.matmul %7, %5, %cst_8 {dimension_numbers = #tpu.dot_dimension_numbers<[1], [0], [0], [1], [0, 0, 1, 1], [], []>} : vector<8x4xf32>, vector<4x324xf32>, vector<8x324xf32> -> vector<8x324xf32>
    %9 = arith.addf %3, %8 : vector<8x324xf32>
    %c0_9 = arith.constant 0 : index
    %c0_10 = arith.constant 0 : index
    %c110 = arith.constant 110 : index
    %10 = vector.load %arg1[%c0_9, %c0_10, %c110] : memref<1x4x580xf32, #tpu.memory_space<vmem>>, vector<1x4x324xf32>
    %11 = vector.shape_cast %10 : vector<1x4x324xf32> to vector<4x324xf32>
    %c1_11 = arith.constant 1 : index
    %c0_12 = arith.constant 0 : index
    %c0_13 = arith.constant 0 : index
    %12 = vector.load %arg2[%c1_11, %c0_12, %c0_13] : memref<9x8x4xf32, #tpu.memory_space<vmem>>, vector<1x8x4xf32>
    %13 = vector.shape_cast %12 : vector<1x8x4xf32> to vector<8x4xf32>
    %cst_14 = arith.constant dense<0.000000e+00> : vector<8x324xf32>
    %14 = tpu.matmul %13, %11, %cst_14 {dimension_numbers = #tpu.dot_dimension_numbers<[1], [0], [0], [1], [0, 0, 1, 1], [], []>} : vector<8x4xf32>, vector<4x324xf32>, vector<8x324xf32> -> vector<8x324xf32>
    %15 = arith.addf %9, %14 : vector<8x324xf32>
    %c0_15 = arith.constant 0 : index
    %c0_16 = arith.constant 0 : index
    %c111 = arith.constant 111 : index
    %16 = vector.load %arg1[%c0_15, %c0_16, %c111] : memref<1x4x580xf32, #tpu.memory_space<vmem>>, vector<1x4x324xf32>
    %17 = vector.shape_cast %16 : vector<1x4x324xf32> to vector<4x324xf32>
    %c2_17 = arith.constant 2 : index
    %c0_18 = arith.constant 0 : index
    %c0_19 = arith.constant 0 : index
    %18 = vector.load %arg2[%c2_17, %c0_18, %c0_19] : memref<9x8x4xf32, #tpu.memory_space<vmem>>, vector<1x8x4xf32>
    %19 = vector.shape_cast %18 : vector<1x8x4xf32> to vector<8x4xf32>
    %cst_20 = arith.constant dense<0.000000e+00> : vector<8x324xf32>
    %20 = tpu.matmul %19, %17, %cst_20 {dimension_numbers = #tpu.dot_dimension_numbers<[1], [0], [0], [1], [0, 0, 1, 1], [], []>} : vector<8x4xf32>, vector<4x324xf32>, vector<8x324xf32> -> vector<8x324xf32>
    %21 = arith.addf %15, %20 : vector<8x324xf32>
    %c0_21 = arith.constant 0 : index
    %c0_22 = arith.constant 0 : index
    %c127 = arith.constant 127 : index
    %22 = vector.load %arg1[%c0_21, %c0_22, %c127] : memref<1x4x580xf32, #tpu.memory_space<vmem>>, vector<1x4x324xf32>
    %23 = vector.shape_cast %22 : vector<1x4x324xf32> to vector<4x324xf32>
    %c3 = arith.constant 3 : index
    %c0_23 = arith.constant 0 : index
    %c0_24 = arith.constant 0 : index
    %24 = vector.load %arg2[%c3, %c0_23, %c0_24] : memref<9x8x4xf32, #tpu.memory_space<vmem>>, vector<1x8x4xf32>
    %25 = vector.shape_cast %24 : vector<1x8x4xf32> to vector<8x4xf32>
    %cst_25 = arith.constant dense<0.000000e+00> : vector<8x324xf32>
    %26 = tpu.matmul %25, %23, %cst_25 {dimension_numbers = #tpu.dot_dimension_numbers<[1], [0], [0], [1], [0, 0, 1, 1], [], []>} : vector<8x4xf32>, vector<4x324xf32>, vector<8x324xf32> -> vector<8x324xf32>
    %27 = arith.addf %21, %26 : vector<8x324xf32>
    %c0_26 = arith.constant 0 : index
    %c0_27 = arith.constant 0 : index
    %c128 = arith.constant 128 : index
    %28 = vector.load %arg1[%c0_26, %c0_27, %c128] : memref<1x4x580xf32, #tpu.memory_space<vmem>>, vector<1x4x324xf32>
    %29 = vector.shape_cast %28 : vector<1x4x324xf32> to vector<4x324xf32>
    %c4 = arith.constant 4 : index
    %c0_28 = arith.constant 0 : index
    %c0_29 = arith.constant 0 : index
    %30 = vector.load %arg2[%c4, %c0_28, %c0_29] : memref<9x8x4xf32, #tpu.memory_space<vmem>>, vector<1x8x4xf32>
    %31 = vector.shape_cast %30 : vector<1x8x4xf32> to vector<8x4xf32>
    %cst_30 = arith.constant dense<0.000000e+00> : vector<8x324xf32>
    %32 = tpu.matmul %31, %29, %cst_30 {dimension_numbers = #tpu.dot_dimension_numbers<[1], [0], [0], [1], [0, 0, 1, 1], [], []>} : vector<8x4xf32>, vector<4x324xf32>, vector<8x324xf32> -> vector<8x324xf32>
    %33 = arith.addf %27, %32 : vector<8x324xf32>
    %c0_31 = arith.constant 0 : index
    %c0_32 = arith.constant 0 : index
    %c129 = arith.constant 129 : index
    %34 = vector.load %arg1[%c0_31, %c0_32, %c129] : memref<1x4x580xf32, #tpu.memory_space<vmem>>, vector<1x4x324xf32>
    %35 = vector.shape_cast %34 : vector<1x4x324xf32> to vector<4x324xf32>
    %c5 = arith.constant 5 : index
    %c0_33 = arith.constant 0 : index
    %c0_34 = arith.constant 0 : index
    %36 = vector.load %arg2[%c5, %c0_33, %c0_34] : memref<9x8x4xf32, #tpu.memory_space<vmem>>, vector<1x8x4xf32>
    %37 = vector.shape_cast %36 : vector<1x8x4xf32> to vector<8x4xf32>
    %cst_35 = arith.constant dense<0.000000e+00> : vector<8x324xf32>
    %38 = tpu.matmul %37, %35, %cst_35 {dimension_numbers = #tpu.dot_dimension_numbers<[1], [0], [0], [1], [0, 0, 1, 1], [], []>} : vector<8x4xf32>, vector<4x324xf32>, vector<8x324xf32> -> vector<8x324xf32>
    %39 = arith.addf %33, %38 : vector<8x324xf32>
    %c0_36 = arith.constant 0 : index
    %c0_37 = arith.constant 0 : index
    %c145 = arith.constant 145 : index
    %40 = vector.load %arg1[%c0_36, %c0_37, %c145] : memref<1x4x580xf32, #tpu.memory_space<vmem>>, vector<1x4x324xf32>
    %41 = vector.shape_cast %40 : vector<1x4x324xf32> to vector<4x324xf32>
    %c6 = arith.constant 6 : index
    %c0_38 = arith.constant 0 : index
    %c0_39 = arith.constant 0 : index
    %42 = vector.load %arg2[%c6, %c0_38, %c0_39] : memref<9x8x4xf32, #tpu.memory_space<vmem>>, vector<1x8x4xf32>
    %43 = vector.shape_cast %42 : vector<1x8x4xf32> to vector<8x4xf32>
    %cst_40 = arith.constant dense<0.000000e+00> : vector<8x324xf32>
    %44 = tpu.matmul %43, %41, %cst_40 {dimension_numbers = #tpu.dot_dimension_numbers<[1], [0], [0], [1], [0, 0, 1, 1], [], []>} : vector<8x4xf32>, vector<4x324xf32>, vector<8x324xf32> -> vector<8x324xf32>
    %45 = arith.addf %39, %44 : vector<8x324xf32>
    %c0_41 = arith.constant 0 : index
    %c0_42 = arith.constant 0 : index
    %c146 = arith.constant 146 : index
    %46 = vector.load %arg1[%c0_41, %c0_42, %c146] : memref<1x4x580xf32, #tpu.memory_space<vmem>>, vector<1x4x324xf32>
    %47 = vector.shape_cast %46 : vector<1x4x324xf32> to vector<4x324xf32>
    %c7 = arith.constant 7 : index
    %c0_43 = arith.constant 0 : index
    %c0_44 = arith.constant 0 : index
    %48 = vector.load %arg2[%c7, %c0_43, %c0_44] : memref<9x8x4xf32, #tpu.memory_space<vmem>>, vector<1x8x4xf32>
    %49 = vector.shape_cast %48 : vector<1x8x4xf32> to vector<8x4xf32>
    %cst_45 = arith.constant dense<0.000000e+00> : vector<8x324xf32>
    %50 = tpu.matmul %49, %47, %cst_45 {dimension_numbers = #tpu.dot_dimension_numbers<[1], [0], [0], [1], [0, 0, 1, 1], [], []>} : vector<8x4xf32>, vector<4x324xf32>, vector<8x324xf32> -> vector<8x324xf32>
    %51 = arith.addf %45, %50 : vector<8x324xf32>
    %c0_46 = arith.constant 0 : index
    %c0_47 = arith.constant 0 : index
    %c147 = arith.constant 147 : index
    %52 = vector.load %arg1[%c0_46, %c0_47, %c147] : memref<1x4x580xf32, #tpu.memory_space<vmem>>, vector<1x4x324xf32>
    %53 = vector.shape_cast %52 : vector<1x4x324xf32> to vector<4x324xf32>
    %c8 = arith.constant 8 : index
    %c0_48 = arith.constant 0 : index
    %c0_49 = arith.constant 0 : index
    %54 = vector.load %arg2[%c8, %c0_48, %c0_49] : memref<9x8x4xf32, #tpu.memory_space<vmem>>, vector<1x8x4xf32>
    %55 = vector.shape_cast %54 : vector<1x8x4xf32> to vector<8x4xf32>
    %cst_50 = arith.constant dense<0.000000e+00> : vector<8x324xf32>
    %56 = tpu.matmul %55, %53, %cst_50 {dimension_numbers = #tpu.dot_dimension_numbers<[1], [0], [0], [1], [0, 0, 1, 1], [], []>} : vector<8x4xf32>, vector<4x324xf32>, vector<8x324xf32> -> vector<8x324xf32>
    %57 = arith.addf %51, %56 : vector<8x324xf32>
    %58 = vector.broadcast %0 : vector<8x1xf32> to vector<8x324xf32>
    %59 = arith.addf %57, %58 : vector<8x324xf32>
    %cst_51 = arith.constant 0.000000e+00 : f32
    %60 = vector.broadcast %cst_51 : f32 to vector<8x324xf32>
    %61 = arith.maximumf %59, %60 : vector<8x324xf32>
    %62 = vector.broadcast %1 : vector<8x1xf32> to vector<8x324xf32>
    %63 = arith.mulf %61, %62 : vector<8x324xf32>
    %cst_52 = arith.constant dense<0.000000e+00> : vector<324xf32>
    %64 = vector.multi_reduction <add>, %63, %cst_52 [0] : vector<8x324xf32> to vector<324xf32>
    %65 = vector.shape_cast %64 : vector<324xf32> to vector<1x324xf32>
    %66 = vector.broadcast %2 : vector<1x1xf32> to vector<1x324xf32>
    %67 = arith.addf %65, %66 : vector<1x324xf32>
    %c0_53 = arith.constant 0 : index
    %c0_54 = arith.constant 0 : index
    %c0_55 = arith.constant 0 : index
    %68 = vector.load %arg4[%c0_53, %c0_54, %c0_55] : memref<1x1x324xf32, #tpu.memory_space<vmem>>, vector<1x1x324xf32>
    %69 = vector.shape_cast %68 : vector<1x1x324xf32> to vector<1x324xf32>
    %70 = vector.shape_cast %67 : vector<1x324xf32> to vector<1x1x324xf32>
    tpu.vector_store %arg4[%c0_53, %c0_54, %c0_55], %70 {strides = array<i32>} : memref<1x1x324xf32, #tpu.memory_space<vmem>>, vector<1x1x324xf32>,
    return
  }
  func.func @transform_0(%arg0: i32) -> (i32, i32, i32) {
    %c0_i32 = arith.constant 0 : i32
    %c0_i32_0 = arith.constant 0 : i32
    %c0_i32_1 = arith.constant 0 : i32
    return %arg0, %c0_i32, %c0_i32_0 : i32, i32, i32
  }
  func.func @transform_1(%arg0: i32) -> (i32, i32, i32) {
    %c0_i32 = arith.constant 0 : i32
    %c0_i32_0 = arith.constant 0 : i32
    %c0_i32_1 = arith.constant 0 : i32
    %c0_i32_2 = arith.constant 0 : i32
    return %c0_i32, %c0_i32_0, %c0_i32_1 : i32, i32, i32
  }
  func.func @transform_2(%arg0: i32) -> (i32, i32) {
    %c0_i32 = arith.constant 0 : i32
    %c0_i32_0 = arith.constant 0 : i32
    %c0_i32_1 = arith.constant 0 : i32
    return %c0_i32, %c0_i32_0 : i32, i32
  }
  func.func @transform_3(%arg0: i32) -> (i32, i32, i32) {
    %c0_i32 = arith.constant 0 : i32
    %c0_i32_0 = arith.constant 0 : i32
    %c0_i32_1 = arith.constant 0 : i32
    return %arg0, %c0_i32, %c0_i32_0 : i32, i32, i32
  }
}

</mosaic_0001>

<bundles_post_ra>
// kernel: edge_extract_classifier.1
= control target key start
LH: loop header
LB: loop body
LE: loop exit
PB: predicated region body
PF: predicated region fallthrough
CT: control target
= control target key end

     0   :  { %s2016_s12 = smov 0   ;;  %s2184_s0 = inlined_call_operand.vmem [shape: f32[2,4,580], index: 0, kind: input, shape index: {}]   ;;  %s2185_s1 = inlined_call_operand.vmem [shape: f32[9,8,4], index: 1, kind: input, shape index: {}]   ;;  %s2186_s2 = inlined_call_operand.vmem [shape: f32[8,4], index: 2, kind: input, shape index: {}]   ;;  %s2187_s3 = inlined_call_operand.vmem [shape: f32[2,1,324], index: 3, kind: output, shape index: {}]  }
   0x1 LB: > { %s1819_s13 = sadd.s32 4294967295, %s1980_s12   ;;  %p1823_p0 = scmp.ge.s32.totalorder %s1980_s12, 1  ;;  %s1980_s12 = sphi %s2016_s12, %s13_s12  }
   0x2   : > { %p137_p1 = scmp.lt.s32.totalorder %s1980_s12, 3 }
   0x4   : > { %p138_p2 = pnand %p1823_p0, %p137_p1 }
   0x5   : > { %p160_p3 = scmp.lt.s32.totalorder (!%p138_p2), %s1819_s13, 1  ;;  %s1984_s18 = smov (!%p138_p2), 18  }
   0x6   : > { %141 = sbr.rel (%p138_p2) target bundleno = 412 (0x19c), region = 32  ;;  %s1985_s19 = smov (!%p138_p2), 19  }
   0x7   : > { %s1986_s20 = smov (!%p138_p2), 17   ;;  %s1987_s21 = smov (!%p138_p2), 1  }
   0x8   : > { %s1988_s22 = smov (!%p138_p2), 127   ;;  %s1989_s23 = smov (!%p138_p2), 111  }
   0x9   : > { %s1992_s24 = smov (!%p138_p2), 110   ;;  %s1993_s25 = smov (!%p138_p2), 109  }
   0xb   : > { %s2189_s13 = smov (!%p160_p3, %s1819_s13), 1  ;;  %v1982_v0 = vmov 0.0   ;;  %vm1983_vm0 = vmmov 0   ;;  %v1990_v10 = vmov 0   ;;  %v1991_v11 = vmov 1   ;;  %v169_v13 = vld [vmem:[%s2186_s2] sm:$0xff] }
   0xc   : > { %1898 = vmatprep.subr.mxu1 %v1982_v0  ;;  %267 = vmatprep.mubr.f32.mxu0 %v1982_v0  ;;  %s1943_s14 = smul.u32 20, %s2189_s13  ;;  %v170_v14 = vld [vmem:[%s2186_s2] sm:$0x1]  ;;  %v1994_v15 = vmov 2   ;;  %vm188_vm1 = vcmask 146432   ;;  %vm196_vm2 = vcmask 1043456  }
   0xd   : > { %1900 = vmatprep.mubr.msk.f32.mxu1 %vm1983_vm0, %v1982_v0  ;;  %1967 = vset.pattern.permute.xlu0 %v1990_v10  ;;  %v1825_v22 = vld [vmem:[%s2185_s1 + $0x8] sm:$0xff]  ;;  %vm192_vm3 = vcmask 31744   ;;  %vm352_vm4 = vcmask 154624   ;;  %v173_v29 = vld [vmem:[%s2185_s1] sm:$0xff]  ;;  %vm522_vm5 = vcmask 138240   ;;  %v1836_v37 = vld [vmem:[%s2185_s1 + $0x10] sm:$0xff] }
   0xe   : > { %s2032_s17 = scalar_lea.vmem %s2184_s0, %s1943_s14  ;;  %1968 = vset.pattern.permute.xlu1 %v1991_v11  ;;  %vm695_vm6 = vcmask 7168   ;;  %v1842_v45 = vld [vmem:[%s2185_s1 + $0x18] sm:$0xff]  ;;  %vm1025_vm7 = vcmask 1039360   ;;  %v1848_v52 = vld [vmem:[%s2185_s1 + $0x20] sm:$0xff]  ;;  %v1854_v56 = vld [vmem:[%s2185_s1 + $0x28] sm:$0xff]  ;;  %vm1194_vm8 = vcmask 908288  }
   0xf   : > { %v172_v1 = vld [vmem:[%s2032_s17 + $0x8] sm:$0xff]  ;;  %v171_v2 = vld [vmem:[%s2032_s17] sm:$0xff]  ;;  %v1860_v61 = vld [vmem:[%s2185_s1 + $0x30] sm:$0xff]  ;;  %vm1363_vm9 = vcmask 900096   ;;  %vm1532_vm10 = vcmask 891904   ;;  %vm1718_vm11 = vcmask 556032  }
  0x10   : > { %184 = vrot.lane.b32.xlu0 %v172_v1, %s1984_s18  ;;  %180 = vrot.lane.b32.xlu1 %v171_v2, %s1984_s18  ;;  %v178_v3 = vcombine.high %v171_v2, %v171_v2  ;;  %v179_v4 = vcombine.high %v172_v1, %v172_v1  ;;  %v2039_v5 = vld [vmem:[%s2032_s17 + $0x4] sm:$0xff]  ;;  %v1013_v7 = vld [vmem:[%s2032_s17 + $0xc] sm:$0xf] }
  0x11   : > { %v2043_v6 = vcombine.high %v2039_v5, %v2039_v5  ;;  %v1182_v8 = vld [vmem:[%s2032_s17 + $0xc] sm:$0xf] }
  0x12   : > { %v1351_v9 = vld [vmem:[%s2032_s17 + $0xc] sm:$0xf] }
  0x13   : > { %v1520_v12 = vld [vmem:[%s2032_s17 + $0xc] sm:$0xf] }
  0x14   : > { %348 = vrot.lane.b32.xlu1 %v172_v1, %s1985_s19  ;;  %182 = vrot.lane.b32.xlu0 %v178_v3, %s1984_s18  ;;  %v853_v48 = vld [vmem:[%s2032_s17 + $0xc] sm:$0xf] }
  0x18   : > { %186 = vrot.lane.b32.xlu1 %v179_v4, %s1984_s18  ;;  %346 = vrot.lane.b32.xlu0 %v178_v3, %s1985_s19 }
  0x1c   : > { %350 = vrot.lane.b32.xlu1 %v179_v4, %s1985_s19  ;;  %344 = vrot.lane.b32.xlu0 %v171_v2, %s1985_s19 }
  0x20   : > { %518 = vrot.lane.b32.xlu1 %v172_v1, %s1986_s20  ;;  %516 = vrot.lane.b32.xlu0 %v178_v3, %s1986_s20 }
  0x24   : > { %520 = vrot.lane.b32.xlu1 %v179_v4, %s1986_s20  ;;  %514 = vrot.lane.b32.xlu0 %v171_v2, %s1986_s20 }
  0x28   : > { %691 = vrot.lane.b32.xlu1 %v172_v1, %s1987_s21  ;;  %689 = vrot.lane.b32.xlu0 %v178_v3, %s1987_s21 }
  0x2c   : > { %693 = vrot.lane.b32.xlu1 %v179_v4, %s1987_s21  ;;  %687 = vrot.lane.b32.xlu0 %v171_v2, %s1987_s21  ;;  %v1866_v2 = vld [vmem:[%s2185_s1 + $0x38] sm:$0xff] }
  0x30   : > { %1023 = vrot.lane.b32.xlu1 %v1013_v7, %s1988_s22  ;;  %1021 = vrot.lane.b32.xlu0 %v2043_v6, %s1988_s22 }
  0x34   : > { %1190 = vrot.lane.b32.xlu1 %v2043_v6, %s1989_s23  ;;  %1019 = vrot.lane.b32.xlu0 %v2039_v5, %s1988_s22 }
  0x38   : > { %1188 = vrot.lane.b32.xlu1 %v2039_v5, %s1989_s23  ;;  %1192 = vrot.lane.b32.xlu0 %v1182_v8, %s1989_s23  ;;  %s1944_s23 = smul.u32 3, %s2189_s13 }
  0x3a   : > { %s168_s26 = scalar_lea.vmem %s2187_s3, %s1944_s23 }
  0x3c   : > { %1361 = vrot.lane.b32.xlu1 %v1351_v9, %s1992_s24  ;;  %1359 = vrot.lane.b32.xlu0 %v2043_v6, %s1992_s24 }
  0x40   : > { %1528 = vrot.lane.b32.xlu1 %v2043_v6, %s1993_s25  ;;  %1357 = vrot.lane.b32.xlu0 %v2039_v5, %s1992_s24 }
  0x44   : > { %1526 = vrot.lane.b32.xlu1 %v2039_v5, %s1993_s25  ;;  %1530 = vrot.lane.b32.xlu0 %v1520_v12, %s1993_s25 }
  0x48   : > { %1690 = vperm.xlu0 %1967, %v169_v13   ;;  %1700 = vperm.xlu1 %1968, %v169_v13  }
  0x4c   : > { %1969 = vset.pattern.permute.xlu1 %v1994_v15  ;;  %1970 = vset.pattern.permute.xlu0 %v1994_v15 }
  0x4d   : > { %1728 = vperm.xlu1 %1969, %v170_v14  }
  0x82   : > { %v185_v16 = vpop.permute.xlu0 %184  ;;  %v181_v17 = vpop.permute.xlu1 %180 }
  0x86   : > { %v349_v18 = vpop.permute.xlu1 %348  ;;  %v183_v19 = vpop.permute.xlu0 %182 }
  0x87   : > { %v190_v20 = vsel %vm188_vm1, %v183_v19, %v185_v16  ;;  %v189_v21 = vsel %vm188_vm1, %v181_v17, %v183_v19 }
  0x88   : > { %1826 = vmatprep.subr.msk.mxu0 %vm196_vm2, %v190_v20 }
  0x89   : > { %1827 = vmatpush1.msk.msra.mxu0 %vm196_vm2, %v189_v21 }
  0x8a   : > { %v187_v23 = vpop.permute.xlu1 %186  ;;  %v347_v24 = vpop.permute.xlu0 %346  ;;  %1828 = vmatmul.mubr.msk.f32.vlgmr.msra.gmra.mxu0 %vm192_vm3, %v1825_v22 }
  0x8b   : > { %v354_v25 = vsel %vm352_vm4, %v347_v24, %v349_v18  ;;  %v191_v26 = vsel %vm188_vm1, %v185_v16, %v187_v23  ;;  %429 = vmatprep.mubr.f32.mxu0 %v1982_v0 }
  0x8c   : > { %1899 = vmatpush3.msk.msra.mxu1 %vm196_vm2, %v191_v26  ;;  %1831 = vmatprep.subr.msk.mxu0 %vm196_vm2, %v354_v25 }
  0x8d   : > { %1903 = vmatprep.subr.mxu1 %v1982_v0  ;;  %1901 = vmatmul.mubr.msk.f32.vlgmr.msra.gmra.mxu1 %vm192_vm3, %v1825_v22 }
  0x8e   : > { %v351_v27 = vpop.permute.xlu1 %350  ;;  %v345_v28 = vpop.permute.xlu0 %344  ;;  %1905 = vmatprep.mubr.msk.f32.mxu1 %vm1983_vm0, %v1982_v0 }
  0x8f   : > { %v355_v30 = vsel %vm352_vm4, %v349_v18, %v351_v27  ;;  %v353_v31 = vsel %vm352_vm4, %v345_v28, %v347_v24 }
  0x90   : > { %1832 = vmatpush1.msk.msra.mxu0 %vm196_vm2, %v353_v31  ;;  %1904 = vmatpush3.msk.msra.mxu1 %vm196_vm2, %v355_v30 }
  0x91   : > { %1908 = vmatprep.subr.mxu1 %v1982_v0  ;;  %1833 = vmatmul.mubr.msk.f32.vlgmr.msra.gmra.mxu0 %vm192_vm3, %v173_v29 }
  0x92   : > { %v519_v32 = vpop.permute.xlu1 %518  ;;  %v517_v33 = vpop.permute.xlu0 %516  ;;  %1906 = vmatmul.mubr.msk.f32.vlgmr.msra.gmra.mxu1 %vm192_vm3, %v173_v29  ;;  %599 = vmatprep.mubr.f32.mxu0 %v1982_v0 }
  0x93   : > { %v524_v34 = vsel %vm522_vm5, %v517_v33, %v519_v32  ;;  %1910 = vmatprep.mubr.msk.f32.mxu1 %vm1983_vm0, %v1982_v0 }
  0x94   : > { %1837 = vmatprep.subr.msk.mxu0 %vm196_vm2, %v524_v34 }
  0x96   : > { %v521_v35 = vpop.permute.xlu1 %520  ;;  %v515_v36 = vpop.permute.xlu0 %514 }
  0x97   : > { %v525_v38 = vsel %vm522_vm5, %v519_v32, %v521_v35  ;;  %v523_v39 = vsel %vm522_vm5, %v515_v36, %v517_v33 }
  0x98   : > { %1838 = vmatpush1.msk.msra.mxu0 %vm196_vm2, %v523_v39  ;;  %1909 = vmatpush3.msk.msra.mxu1 %vm196_vm2, %v525_v38 }
  0x99   : > { %1839 = vmatmul.mubr.msk.f32.vlgmr.msra.gmra.mxu0 %vm192_vm3, %v1836_v37  ;;  %1911 = vmatmul.mubr.msk.f32.vlgmr.msra.gmra.mxu1 %vm192_vm3, %v1836_v37 }
  0x9a   : > { %v692_v40 = vpop.permute.xlu1 %691  ;;  %v690_v41 = vpop.permute.xlu0 %689  ;;  %1913 = vmatprep.subr.mxu1 %v1982_v0  ;;  %772 = vmatprep.mubr.f32.mxu0 %v1982_v0 }
  0x9b   : > { %v697_v42 = vsel %vm695_vm6, %v690_v41, %v692_v40  ;;  %1915 = vmatprep.mubr.msk.f32.mxu1 %vm1983_vm0, %v1982_v0 }
  0x9c   : > { %1843 = vmatprep.subr.msk.mxu0 %vm196_vm2, %v697_v42 }
  0x9e   : > { %v694_v43 = vpop.permute.xlu1 %693  ;;  %v688_v44 = vpop.permute.xlu0 %687 }
  0x9f   : > { %v698_v46 = vsel %vm695_vm6, %v692_v40, %v694_v43  ;;  %v696_v47 = vsel %vm695_vm6, %v688_v44, %v690_v41 }
  0xa0   : > { %1844 = vmatpush1.msk.msra.mxu0 %vm196_vm2, %v696_v47  ;;  %1914 = vmatpush3.msk.msra.mxu1 %vm196_vm2, %v698_v46 }
  0xa1   : > { %1845 = vmatmul.mubr.msk.f32.vlgmr.msra.gmra.mxu0 %vm192_vm3, %v1842_v45  ;;  %1916 = vmatmul.mubr.msk.f32.vlgmr.msra.gmra.mxu1 %vm192_vm3, %v1842_v45 }
  0xa2   : > { %1918 = vmatprep.subr.mxu1 %v1982_v0  ;;  %v1024_v49 = vpop.permute.xlu1 %1023  ;;  %1849 = vmatprep.subr.msk.mxu0 %vm196_vm2, %v2043_v6  ;;  %v1022_v50 = vpop.permute.xlu0 %1021  ;;  %v1872_v6 = vld [vmem:[%s2185_s1 + $0x40] sm:$0xff] }
  0xa3   : > { %v1027_v51 = vsel %vm1025_vm7, %v1022_v50, %v1024_v49  ;;  %1850 = vmatpush1.msk.msra.mxu0 %vm196_vm2, %v2039_v5  ;;  %1919 = vmatpush3.msk.msra.mxu1 %vm196_vm2, %v853_v48 }
  0xa4   : > { %932 = vmatprep.mubr.f32.mxu0 %v1982_v0  ;;  %1920 = vmatprep.mubr.msk.f32.mxu1 %vm1983_vm0, %v1982_v0 }
  0xa5   : > { %1855 = vmatprep.subr.msk.mxu0 %vm196_vm2, %v1027_v51  ;;  %1923 = vmatprep.subr.mxu1 %v1982_v0 }
  0xa6   : > { %1851 = vmatmul.mubr.msk.f32.vlgmr.msra.gmra.mxu0 %vm192_vm3, %v1848_v52  ;;  %1921 = vmatmul.mubr.msk.f32.vlgmr.msra.gmra.mxu1 %vm192_vm3, %v1848_v52  ;;  %v1191_v53 = vpop.permute.xlu1 %1190  ;;  %v1020_v54 = vpop.permute.xlu0 %1019 }
  0xa7   : > { %1924 = vmatpush3.msk.msra.mxu1 %vm196_vm2, %v1024_v49  ;;  %v1026_v55 = vsel %vm1025_vm7, %v1020_v54, %v1022_v50  ;;  %1101 = vmatprep.mubr.f32.mxu0 %v1982_v0 }
  0xa8   : > { %1856 = vmatpush1.msk.msra.mxu0 %vm196_vm2, %v1026_v55  ;;  %1925 = vmatprep.mubr.msk.f32.mxu1 %vm1983_vm0, %v1982_v0 }
  0xa9   : > { %1928 = vmatprep.subr.mxu1 %v1982_v0 }
  0xaa   : > { %1857 = vmatmul.mubr.msk.f32.vlgmr.msra.gmra.mxu0 %vm192_vm3, %v1854_v56  ;;  %1926 = vmatmul.mubr.msk.f32.vlgmr.msra.gmra.mxu1 %vm192_vm3, %v1854_v56  ;;  %v1189_v57 = vpop.permute.xlu1 %1188  ;;  %v1193_v58 = vpop.permute.xlu0 %1192 }
  0xab   : > { %v1195_v59 = vsel %vm1194_vm8, %v1189_v57, %v1191_v53  ;;  %v1196_v60 = vsel %vm1194_vm8, %v1191_v53, %v1193_v58  ;;  %1929 = vmatpush3.msk.msra.mxu1 %vm196_vm2, %v1193_v58  ;;  %1930 = vmatprep.mubr.msk.f32.mxu1 %vm1983_vm0, %v1982_v0 }
  0xac   : > { %1861 = vmatprep.subr.msk.mxu0 %vm196_vm2, %v1196_v60  ;;  %1270 = vmatprep.mubr.f32.mxu0 %v1982_v0 }
  0xad   : > { %1862 = vmatpush1.msk.msra.mxu0 %vm196_vm2, %v1195_v59  ;;  %1933 = vmatprep.subr.mxu1 %v1982_v0 }
  0xae   : > { %1931 = vmatmul.mubr.msk.f32.vlgmr.msra.gmra.mxu1 %vm192_vm3, %v1860_v61  ;;  %v1362_v62 = vpop.permute.xlu1 %1361  ;;  %1863 = vmatmul.mubr.msk.f32.vlgmr.msra.gmra.mxu0 %vm192_vm3, %v1860_v61  ;;  %v1360_v63 = vpop.permute.xlu0 %1359 }
  0xaf   : > { %v1365_v1 = vsel %vm1363_vm9, %v1360_v63, %v1362_v62  ;;  %1934 = vmatpush3.msk.msra.mxu1 %vm196_vm2, %v1362_v62  ;;  %1935 = vmatprep.mubr.msk.f32.mxu1 %vm1983_vm0, %v1982_v0 }
  0xb0   : > { %1867 = vmatprep.subr.msk.mxu0 %vm196_vm2, %v1365_v1  ;;  %1439 = vmatprep.mubr.f32.mxu0 %v1982_v0 }
  0xb1   : > { %1938 = vmatprep.subr.mxu1 %v1982_v0 }
  0xb2   : > { %1936 = vmatmul.mubr.msk.f32.vlgmr.msra.gmra.mxu1 %vm192_vm3, %v1866_v2  ;;  %v1529_v3 = vpop.permute.xlu1 %1528  ;;  %v1358_v4 = vpop.permute.xlu0 %1357 }
  0xb3   : > { %v1364_v5 = vsel %vm1363_vm9, %v1358_v4, %v1360_v63  ;;  %1940 = vmatprep.mubr.msk.f32.mxu1 %vm1983_vm0, %v1982_v0 }
  0xb4   : > { %1868 = vmatpush1.msk.msra.mxu0 %vm196_vm2, %v1364_v5 }
  0xb5   : > { %1869 = vmatmul.mubr.msk.f32.vlgmr.msra.gmra.mxu0 %vm192_vm3, %v1866_v2 }
  0xb6   : > { %v1527_v7 = vpop.permute.xlu1 %1526  ;;  %v1531_v8 = vpop.permute.xlu0 %1530  ;;  %1608 = vmatprep.mubr.f32.mxu0 %v1982_v0 }
  0xb7   : > { %v1533_v9 = vsel %vm1532_vm10, %v1527_v7, %v1529_v3  ;;  %v1534_v10 = vsel %vm1532_vm10, %v1529_v3, %v1531_v8  ;;  %1939 = vmatpush3.msk.msra.mxu1 %vm196_vm2, %v1531_v8 }
  0xb8   : > { %1873 = vmatprep.subr.msk.mxu0 %vm196_vm2, %v1534_v10  ;;  %1941 = vmatmul.mubr.msk.f32.vlgmr.msra.gmra.mxu1 %vm192_vm3, %v1872_v6 }
  0xb9   : > { %1874 = vmatpush1.msk.msra.mxu0 %vm196_vm2, %v1533_v9 }
  0xba   : > { %1875 = vmatmul.mubr.msk.f32.vlgmr.msra.gmra.mxu0 %vm192_vm3, %v1872_v6 }
  0xc3   : > { %v1691_v61 = vpop.permute.xlu0 %1690  ;;  %v1701_v8 = vpop.permute.xlu1 %1700 }
 0x14a   : > { %v269_v11 = vpop.f32.mrf.mxu0 }
 0x14c   : > { %v271_v13 = vpop.f32.mrf.mxu0 }
 0x14d   : > { %v340_v12 = vpop.f32.mrf.mxu1 }
 0x14f   : > { %v1902_v14 = vpop.f32.mrf.mxu1 }
 0x151   : > { %v431_v16 = vpop.f32.mrf.mxu0 }
 0x152   : > { %v502_v15 = vpop.f32.mrf.mxu1  ;;  %v432_v33 = vadd.f32 %v431_v16, %v269_v11 }
 0x153   : > { %v433_v0 = vpop.f32.mrf.mxu0  ;;  %v503_v28 = vadd.f32 %v502_v15, %v340_v12 }
 0x154   : > { %v1907_v17 = vpop.f32.mrf.mxu1  ;;  %v434_v37 = vadd.f32 %v433_v0, %v271_v13 }
 0x159   : > { %v672_v18 = vpop.f32.mrf.mxu1  ;;  %v601_v19 = vpop.f32.mrf.mxu0 }
 0x15a   : > { %v678_v34 = vadd.f32 %v672_v18, %v503_v28  ;;  %v676_v39 = vadd.f32 %v601_v19, %v432_v33 }
 0x15b   : > { %v1912_v20 = vpop.f32.mrf.mxu1  ;;  %v603_v21 = vpop.f32.mrf.mxu0 }
 0x15c   : > { %v677_v43 = vadd.f32 %v603_v21, %v434_v37 }
 0x161   : > { %v774_v22 = vpop.f32.mrf.mxu0  ;;  %v845_v23 = vpop.f32.mrf.mxu1 }
 0x162   : > { %v851_v40 = vadd.f32 %v845_v23, %v678_v34  ;;  %v849_v44 = vadd.f32 %v774_v22, %v676_v39 }
 0x163   : > { %v776_v24 = vpop.f32.mrf.mxu0  ;;  %v1917_v25 = vpop.f32.mrf.mxu1 }
 0x164   : > { %v850_v47 = vadd.f32 %v776_v24, %v677_v43 }
 0x166   : > { %v934_v26 = vpop.f32.mrf.mxu0  ;;  %v1005_v27 = vpop.f32.mrf.mxu1 }
 0x167   : > { %v1011_v45 = vadd.f32 %v1005_v27, %v851_v40  ;;  %v1009_v48 = vadd.f32 %v934_v26, %v849_v44  ;;  %v1741_v26 = vlaneseq  ;;  %v1729_v40 = vpop.permute.xlu1 %1728 }
 0x168   : > { %v936_v29 = vpop.f32.mrf.mxu0  ;;  %v1922_v30 = vpop.f32.mrf.mxu1 }
 0x169   : > { %v1010_v52 = vadd.f32 %v936_v29, %v850_v47  ;;  %v1995_v29 = vmov 1966171168   ;;  %vm1763_vm12 = vcmp.lt.s32.totalorder %v1741_v26, 324 }
 0x16a   : > { %v1103_v31 = vpop.f32.mrf.mxu0  ;;  %v1174_v32 = vpop.f32.mrf.mxu1  ;;  %v1739_v30 = vunpack.c.l.s4 %v1995_v29 }
 0x16b   : > { %v1180_v49 = vadd.f32 %v1174_v32, %v1011_v45  ;;  %v1178_v53 = vadd.f32 %v1103_v31, %v1009_v48 }
 0x16c   : > { %v1105_v35 = vpop.f32.mrf.mxu0  ;;  %v1927_v36 = vpop.f32.mrf.mxu1 }
 0x16d   : > { %v1179_v56 = vadd.f32 %v1105_v35, %v1010_v52  ;;  %v1742_v35 = vshrl.u32 %v1741_v26, 7  ;;  %v1740_v36 = vunpack.c.0.s8 %v1739_v30 }
 0x16e   : > { %v1343_v38 = vpop.f32.mrf.mxu1  ;;  %v1272_v41 = vpop.f32.mrf.mxu0 }
 0x16f   : > { %v1349_v54 = vadd.f32 %v1343_v38, %v1180_v49  ;;  %v1347_v57 = vadd.f32 %v1272_v41, %v1178_v53 }
 0x170   : > { %v1932_v42 = vpop.f32.mrf.mxu1  ;;  %v1274_v50 = vpop.f32.mrf.mxu0 }
 0x171   : > { %v1348_v62 = vadd.f32 %v1274_v50, %v1179_v56  ;;  %v1743_v42 = vsub.s32 %v1740_v36, %v1742_v35 }
 0x172   : > { %v1512_v46 = vpop.f32.mrf.mxu1 }
 0x173   : > { %v1518_v58 = vadd.f32 %v1512_v46, %v1349_v54 }
 0x174   : > { %v1937_v51 = vpop.f32.mrf.mxu1 }
 0x175   : > { %v1441_v55 = vpop.f32.mrf.mxu0 }
 0x176   : > { %v1516_v63 = vadd.f32 %v1441_v55, %v1347_v57 }
 0x177   : > { %v1443_v59 = vpop.f32.mrf.mxu0 }
 0x178   : > { %v1681_v60 = vpop.f32.mrf.mxu1  ;;  %v1517_v4 = vadd.f32 %v1443_v59, %v1348_v62 }
 0x179   : > { %v1687_v1 = vadd.f32 %v1681_v60, %v1518_v58 }
 0x17a   : > { %v1610_v2 = vpop.f32.mrf.mxu0  ;;  %v1942_v3 = vpop.f32.mrf.mxu1 }
 0x17b   : > { %v1685_v5 = vadd.f32 %v1610_v2, %v1516_v63  ;;  %v1695_v6 = vadd.f32 %v1691_v61, %v1687_v1 }
 0x17c   : > { %v1612_v7 = vpop.f32.mrf.mxu0 }
 0x17d   : > { %v1693_v9 = vadd.f32 %v1691_v61, %v1685_v5  ;;  %v1698_v10 = vmax.f32 %v1695_v6, 0.0  ;;  %v1686_v11 = vadd.f32 %v1612_v7, %v1517_v4 }
 0x17f   : > { %v1696_v12 = vmax.f32 %v1693_v9, 0.0  ;;  %v1694_v13 = vadd.f32 %v1691_v61, %v1686_v11  ;;  %v1705_v14 = vmul.f32 %v1701_v8, %v1698_v10 }
 0x181   : > { %v1697_v15 = vmax.f32 %v1694_v13, 0.0  ;;  %v1703_v16 = vmul.f32 %v1701_v8, %v1696_v12  ;;  %v1719_v17 = vsel %vm1718_vm11, %v1705_v14, 0.0 }
 0x182   : > { %v1720_v0 = vrot.slane %v1719_v17, 4 }
 0x183   : > { %v1704_v18 = vmul.f32 %v1701_v8, %v1697_v15  ;;  %v1706_v19 = vrot.slane %v1703_v16, 4 }
 0x184   : > { %v1721_v20 = vadd.f32 %v1720_v0, %v1719_v17 }
 0x185   : > { %v1707_v21 = vadd.f32 %v1706_v19, %v1703_v16  ;;  %v1712_v22 = vrot.slane %v1704_v18, 4 }
 0x186   : > { %v1722_v23 = vrot.slane %v1721_v20, 2 }
 0x187   : > { %v1708_v24 = vrot.slane %v1707_v21, 2  ;;  %v1713_v25 = vadd.f32 %v1712_v22, %v1704_v18 }
 0x188   : > { %v1723_v27 = vadd.f32 %v1722_v23, %v1721_v20 }
 0x189   : > { %v1714_v28 = vrot.slane %v1713_v25, 2  ;;  %v1709_v31 = vadd.f32 %v1708_v24, %v1707_v21 }
 0x18a   : > { %v1724_v32 = vrot.slane %v1723_v27, 1 }
 0x18b   : > { %v1710_v33 = vrot.slane %v1709_v31, 1  ;;  %v1715_v34 = vadd.f32 %v1714_v28, %v1713_v25 }
 0x18c   : > { %v1725_v39 = vadd.f32 %v1724_v32, %v1723_v27 }
 0x18d   : > { %v1711_v37 = vadd.f32 %v1710_v33, %v1709_v31  ;;  %v1716_v38 = vrot.slane %v1715_v34, 1 }
 0x18e   : > { %v1733_v45 = vadd.f32 %v1729_v40, %v1725_v39 }
 0x18f   : > { %v1717_v41 = vadd.f32 %v1716_v38, %v1715_v34  ;;  %v1731_v43 = vadd.f32 %v1729_v40, %v1711_v37 }
 0x190   : > { %v1751_v48 = vrot.slane %v1733_v45, %v1743_v42 }
 0x191   : > { %v1732_v44 = vadd.f32 %v1729_v40, %v1717_v41 }
 0x193   : > { %v1737_v46 = vcombine.low %v1731_v43, %v1732_v44 }
 0x195   : > { %v1744_v47 = vrot.slane %v1737_v46, %v1743_v42 }
 0x197   : > { %v1752_v49 = vcombine.low %v1744_v47, %v1751_v48 }
 0x199   : > { %v1759_v50 = vrot.slane %v1752_v49, %v1743_v42 }
 0x19b   : > { %1765 = vst.msk [vmem:[%s168_s26] sm:$0x7] %vm1763_vm12, %v1759_v50 }
 0x19c PF: > { %s13_s12 = sadd.s32 1, %s1980_s12  }
 0x19d   : > { %p10_p4 = scmp.ge.s32.totalorder %s13_s12, 4  }
 0x19f   :  { %12 = sbr.rel (!%p10_p4) target bundleno = 1 (0x1), region = 70 }

</bundles_post_ra>
